<compile_context>
chip_gen: v7x
topology: tpu7x:2x2x1
jax: 0.10.0
libtpu: 0.0.40
codegen_flags: <defaults>
</compile_context>

<pallas_src>
import functools

import jax
import jax.numpy as jnp
from jax.experimental import pallas as pl
from jax.experimental.pallas import tpu as pltpu


# ----------------------------------------------------------------------------
# Kernel: fused linear + LoRA (+ optional activation)
# ----------------------------------------------------------------------------
def _linear_lora_kernel(x_ref, wt_ref, b_ref, at_ref, bt_ref, o_ref, *, act):
    x = x_ref[...]
    # Main projection on the MXU, f32 accumulation.
    y = jnp.dot(x, wt_ref[...], preferred_element_type=jnp.float32)
    y = y + b_ref[...].astype(jnp.float32)
    # Low-rank update: (x @ A^T) @ B^T  — rank << D, cheap extra MXU work.
    z = jnp.dot(x, at_ref[...], preferred_element_type=jnp.float32)
    y = y + jnp.dot(z.astype(bt_ref.dtype), bt_ref[...],
                    preferred_element_type=jnp.float32)
    if act == "gelu":
        # TODO(synk): SAM's MLPBlock uses exact (erf) nn.GELU; tanh-approx GELU
        # is used here for a guaranteed EUP lowering.
        y = jax.nn.gelu(y, approximate=True)
    o_ref[...] = y.astype(o_ref.dtype)


# ----------------------------------------------------------------------------
# Wrapper plumbing
# ----------------------------------------------------------------------------
def _round_up(n, m):
    return ((n + m - 1) // m) * m


def _choose_tm(M, tm):
    """Large-but-fitting M tile; keep >=2 grid steps so v7x megacore splits."""
    tm = min(tm, _round_up(M, 8))
    if M > 8 and pl.cdiv(M, tm) < 2:
        tm = _round_up(pl.cdiv(M, 2), 8)
    return tm


def linear_lora(x2d, wt, b, at, bt, *, act=None, tm=256):
    """y = act(x2d @ wt + b + (x2d @ at) @ bt), tiled over rows of x2d.

    wt: (K, N) pre-transposed main weight (lane-dense MXU RHS)
    at: (K, R) pre-transposed LoRA down-projection(s)
    bt: (R, N) pre-transposed (and, for qkv, zero-padded) LoRA up-projection(s)
    """
    M, K = x2d.shape
    N = wt.shape[1]
    R = at.shape[1]

    tm = _choose_tm(M, tm)
    Mp = _round_up(M, tm)
    xp = jnp.pad(x2d, ((0, Mp - M), (0, 0))) if Mp != M else x2d
    b2 = b.reshape(1, N)

    out = pl.pallas_call(
        functools.partial(_linear_lora_kernel, act=act),
        out_shape=jax.ShapeDtypeStruct((Mp, N), x2d.dtype),
        grid=(Mp // tm,),
        in_specs=[
            pl.BlockSpec((tm, K), lambda i: (i, 0)),   # activations: tiled over M
            pl.BlockSpec((K, N), lambda i: (0, 0)),    # main weight: resident
            pl.BlockSpec((1, N), lambda i: (0, 0)),    # bias: resident
            pl.BlockSpec((K, R), lambda i: (0, 0)),    # LoRA A^T: resident
            pl.BlockSpec((R, N), lambda i: (0, 0)),    # LoRA B^T: resident
        ],
        out_specs=pl.BlockSpec((tm, N), lambda i: (i, 0)),
        compiler_params=pltpu.CompilerParams(
            dimension_semantics=("parallel",)),
    )(xp, wt, b2, at, bt)
    return out[:M] if Mp != M else out


# ----------------------------------------------------------------------------
# One-time parameter fusion (outside the per-forward hot path)
# ----------------------------------------------------------------------------
def make_attention_lora_params(w_qkv, b_qkv, a_q, b_q, a_v, b_v, alpha=1.0):
    """Fuse AttentionLoRA params so linear_lora reproduces its forward.

    w_qkv: (3D, D)  b_qkv: (3D,)
    a_q, a_v: (r, D)   b_q, b_v: (D, r)   (torch nn.Linear weight layouts)
    """
    D = w_qkv.shape[1]
    r = a_q.shape[0]
    wt = w_qkv.T                                        # (D, 3D)
    at = jnp.concatenate([a_q, a_v], axis=0).T          # (D, 2r)
    bt = jnp.zeros((2 * r, 3 * D), w_qkv.dtype)
    bt = bt.at[:r, :D].set(alpha * b_q.T)               # q slice
    bt = bt.at[r:, 2 * D:].set(alpha * b_v.T)           # v slice (k slice stays 0)
    return wt, b_qkv, at, bt


def make_mlp_lora_params(w1, b1, a1, bl1, w2, b2, a2, bl2):
    """Pre-transpose MLPLoRA params once."""
    return (w1.T, b1, a1.T, bl1.T), (w2.T, b2, a2.T, bl2.T)


# ----------------------------------------------------------------------------
# Module forwards
# ----------------------------------------------------------------------------
def lora_surgery_forward(x):
    """LoRASurgery.forward(x): identity — returned directly, zero cost."""
    return x


def attention_lora_forward(x_bhwc, wt, b, at, bt, *, tm=256):
    """AttentionLoRA.forward on SAM block input (B, H, W, D) -> (B, H, W, 3D)."""
    B, H, W, D = x_bhwc.shape
    N = wt.shape[1]
    y = linear_lora(x_bhwc.reshape(B * H * W, D), wt, b, at, bt, tm=tm)
    return y.reshape(B, H, W, N)


def mlp_lora_forward(x_bhwc, p1, p2, *, tm=256):
    """MLPLoRA.forward on (B, H, W, D): lin1+LoRA -> GELU -> lin2+LoRA."""
    B, H, W, D = x_bhwc.shape
    x2d = x_bhwc.reshape(B * H * W, D)
    h = linear_lora(x2d, *p1, act="gelu", tm=tm)
    y = linear_lora(h, *p2, act=None, tm=tm)
    return y.reshape(B, H, W, D)


# ----------------------------------------------------------------------------
# Main
# ----------------------------------------------------------------------------
if __name__ == "__main__":
    key = jax.random.PRNGKey(0)
    ks = jax.random.split(key, 16)

    # SAM ViT block input layout: (B, H, W, C).  Small shapes.
    B, H, W, D = 2, 8, 8, 32
    RANK = 4
    HID = 4 * D  # SAM MLP ratio 4

    x = jax.random.normal(ks[0], (B, H, W, D), dtype=jnp.float32)
    x2d = x.reshape(B * H * W, D)

    # --- LoRASurgery.forward: identity --------------------------------------
    y_id = lora_surgery_forward(x)
    jax.block_until_ready(y_id)
    assert jnp.array_equal(y_id, x)

    # --- AttentionLoRA around attn.qkv (Linear D -> 3D, LoRA on q & v) ------
    # NOTE: at nn.init time the LoRA B matrices are zeros; random values here
    # exercise the fused math of a trained adapter.
    w_qkv = jax.random.normal(ks[1], (3 * D, D), jnp.float32) * 0.05
    b_qkv = jax.random.normal(ks[2], (3 * D,), jnp.float32) * 0.05
    a_q = jax.random.normal(ks[3], (RANK, D), jnp.float32) * 0.1
    b_q = jax.random.normal(ks[4], (D, RANK), jnp.float32) * 0.1
    a_v = jax.random.normal(ks[5], (RANK, D), jnp.float32) * 0.1
    b_v = jax.random.normal(ks[6], (D, RANK), jnp.float32) * 0.1

    qkv_params = make_attention_lora_params(w_qkv, b_qkv, a_q, b_q, a_v, b_v)
    y_qkv = attention_lora_forward(x, *qkv_params)
    jax.block_until_ready(y_qkv)

    qkv_base = x2d @ w_qkv.T + b_qkv
    new_q = (x2d @ a_q.T) @ b_q.T
    new_v = (x2d @ a_v.T) @ b_v.T
    ref_qkv = jnp.concatenate(
        [qkv_base[:, :D] + new_q,
         qkv_base[:, D:2 * D],
         qkv_base[:, 2 * D:] + new_v],
        axis=-1).reshape(B, H, W, 3 * D)
    assert jnp.allclose(y_qkv, ref_qkv, atol=1e-3, rtol=1e-3)

    # --- MLPLoRA around block.mlp (lin1 D->4D, GELU, lin2 4D->D) ------------
    w1 = jax.random.normal(ks[7], (HID, D), jnp.float32) * 0.05
    bb1 = jax.random.normal(ks[8], (HID,), jnp.float32) * 0.05
    a1 = jax.random.normal(ks[9], (RANK, D), jnp.float32) * 0.1
    bl1 = jax.random.normal(ks[10], (HID, RANK), jnp.float32) * 0.1
    w2 = jax.random.normal(ks[11], (D, HID), jnp.float32) * 0.05
    bb2 = jax.random.normal(ks[12], (D,), jnp.float32) * 0.05
    a2 = jax.random.normal(ks[13], (RANK, HID), jnp.float32) * 0.1
    bl2 = jax.random.normal(ks[14], (D, RANK), jnp.float32) * 0.1

    p1, p2 = make_mlp_lora_params(w1, bb1, a1, bl1, w2, bb2, a2, bl2)
    y_mlp = mlp_lora_forward(x, p1, p2)
    jax.block_until_ready(y_mlp)

    h_ref = jax.nn.gelu(x2d @ w1.T + bb1 + (x2d @ a1.T) @ bl1.T, approximate=True)
    y_ref = (h_ref @ w2.T + bb2 + (h_ref @ a2.T) @ bl2.T).reshape(B, H, W, D)
    assert jnp.allclose(y_mlp, y_ref, atol=1e-3, rtol=1e-3)

    print("KERNEL_OK")
</pallas_src>

<mosaic_0001>
module attributes {stable_mosaic.version = 11 : i64} {
  func.func @_linear_lora_kernel(%arg0: i32, %arg1: memref<64x32xf32, #tpu.memory_space<vmem>>, %arg2: memref<32x96xf32, #tpu.memory_space<vmem>>, %arg3: memref<1x96xf32, #tpu.memory_space<vmem>>, %arg4: memref<32x8xf32, #tpu.memory_space<vmem>>, %arg5: memref<8x96xf32, #tpu.memory_space<vmem>>, %arg6: memref<64x96xf32, #tpu.memory_space<vmem>>) attributes {dimension_semantics = [#tpu.dimension_semantics<parallel>], iteration_bounds = array<i64: 2>, scalar_prefetch = 0 : i64, scratch_operands = 0 : i64, tpu.core_type = #tpu.core_type<tc>, window_params = [{transform_indices = @transform_0, window_bounds = array<i64: 64, 32>}, {pipeline_mode = #tpu.pipeline_mode<synchronous>, transform_indices = @transform_1, window_bounds = array<i64: 32, 96>}, {pipeline_mode = #tpu.pipeline_mode<synchronous>, transform_indices = @transform_2, window_bounds = array<i64: 1, 96>}, {pipeline_mode = #tpu.pipeline_mode<synchronous>, transform_indices = @transform_3, window_bounds = array<i64: 32, 8>}, {pipeline_mode = #tpu.pipeline_mode<synchronous>, transform_indices = @transform_4, window_bounds = array<i64: 8, 96>}, {transform_indices = @transform_5, window_bounds = array<i64: 64, 96>}]} {
    %c0 = arith.constant 0 : index
    %c0_0 = arith.constant 0 : index
    %0 = vector.load %arg1[%c0, %c0_0] : memref<64x32xf32, #tpu.memory_space<vmem>>, vector<64x32xf32>
    %c0_1 = arith.constant 0 : index
    %c0_2 = arith.constant 0 : index
    %1 = vector.load %arg2[%c0_1, %c0_2] : memref<32x96xf32, #tpu.memory_space<vmem>>, vector<32x96xf32>
    %cst = arith.constant dense<0.000000e+00> : vector<64x96xf32>
    %2 = tpu.matmul %0, %1, %cst {dimension_numbers = #tpu.dot_dimension_numbers<[1], [0], [0], [1], [0, 0, 1, 1], [], []>} : vector<64x32xf32>, vector<32x96xf32>, vector<64x96xf32> -> vector<64x96xf32>
    %c0_3 = arith.constant 0 : index
    %c0_4 = arith.constant 0 : index
    %3 = vector.load %arg3[%c0_3, %c0_4] : memref<1x96xf32, #tpu.memory_space<vmem>>, vector<1x96xf32>
    %4 = vector.broadcast %3 : vector<1x96xf32> to vector<64x96xf32>
    %5 = arith.addf %2, %4 : vector<64x96xf32>
    %c0_5 = arith.constant 0 : index
    %c0_6 = arith.constant 0 : index
    %6 = vector.load %arg4[%c0_5, %c0_6] : memref<32x8xf32, #tpu.memory_space<vmem>>, vector<32x8xf32>
    %cst_7 = arith.constant dense<0.000000e+00> : vector<64x8xf32>
    %7 = tpu.matmul %0, %6, %cst_7 {dimension_numbers = #tpu.dot_dimension_numbers<[1], [0], [0], [1], [0, 0, 1, 1], [], []>} : vector<64x32xf32>, vector<32x8xf32>, vector<64x8xf32> -> vector<64x8xf32>
    %c0_8 = arith.constant 0 : index
    %c0_9 = arith.constant 0 : index
    %8 = vector.load %arg5[%c0_8, %c0_9] : memref<8x96xf32, #tpu.memory_space<vmem>>, vector<8x96xf32>
    %cst_10 = arith.constant dense<0.000000e+00> : vector<64x96xf32>
    %9 = tpu.matmul %7, %8, %cst_10 {dimension_numbers = #tpu.dot_dimension_numbers<[1], [0], [0], [1], [0, 0, 1, 1], [], []>} : vector<64x8xf32>, vector<8x96xf32>, vector<64x96xf32> -> vector<64x96xf32>
    %10 = arith.addf %5, %9 : vector<64x96xf32>
    %c0_11 = arith.constant 0 : index
    %c0_12 = arith.constant 0 : index
    %11 = vector.load %arg6[%c0_11, %c0_12] : memref<64x96xf32, #tpu.memory_space<vmem>>, vector<64x96xf32>
    tpu.vector_store %arg6[%c0_11, %c0_12], %10 {strides = array<i32>} : memref<64x96xf32, #tpu.memory_space<vmem>>, vector<64x96xf32>,
    return
  }
  func.func @transform_0(%arg0: i32) -> (i32, i32) {
    %c0_i32 = arith.constant 0 : i32
    %c0_i32_0 = arith.constant 0 : i32
    return %arg0, %c0_i32 : i32, i32
  }
  func.func @transform_1(%arg0: i32) -> (i32, i32) {
    %c0_i32 = arith.constant 0 : i32
    %c0_i32_0 = arith.constant 0 : i32
    %c0_i32_1 = arith.constant 0 : i32
    return %c0_i32, %c0_i32_0 : i32, i32
  }
  func.func @transform_2(%arg0: i32) -> (i32, i32) {
    %c0_i32 = arith.constant 0 : i32
    %c0_i32_0 = arith.constant 0 : i32
    %c0_i32_1 = arith.constant 0 : i32
    return %c0_i32, %c0_i32_0 : i32, i32
  }
  func.func @transform_3(%arg0: i32) -> (i32, i32) {
    %c0_i32 = arith.constant 0 : i32
    %c0_i32_0 = arith.constant 0 : i32
    %c0_i32_1 = arith.constant 0 : i32
    return %c0_i32, %c0_i32_0 : i32, i32
  }
  func.func @transform_4(%arg0: i32) -> (i32, i32) {
    %c0_i32 = arith.constant 0 : i32
    %c0_i32_0 = arith.constant 0 : i32
    %c0_i32_1 = arith.constant 0 : i32
    return %c0_i32, %c0_i32_0 : i32, i32
  }
  func.func @transform_5(%arg0: i32) -> (i32, i32) {
    %c0_i32 = arith.constant 0 : i32
    %c0_i32_0 = arith.constant 0 : i32
    return %arg0, %c0_i32 : i32, i32
  }
}

</mosaic_0001>

<bundles_post_ra>
// kernel: tpu_custom_call.1
= control target key start
LH: loop header
LB: loop body
LE: loop exit
PB: predicated region body
PF: predicated region fallthrough
CT: control target
= control target key end

     0   :  { %s895_s18 = smov 0   ;;  %s981_s0 = inlined_call_operand.vmem [shape: f32[128,32], index: 0, kind: input, shape index: {}]   ;;  %s982_s1 = inlined_call_operand.vmem [shape: f32[32,96], index: 1, kind: input, shape index: {}]   ;;  %s983_s2 = inlined_call_operand.vmem [shape: f32[1,96], index: 2, kind: input, shape index: {}]   ;;  %s984_s3 = inlined_call_operand.vmem [shape: f32[32,8], index: 3, kind: input, shape index: {}]   ;;  %s985_s4 = inlined_call_operand.vmem [shape: f32[8,96], index: 4, kind: input, shape index: {}]   ;;  %s986_s5 = inlined_call_operand.vmem [shape: f32[128,96], index: 5, kind: output, shape index: {}]  }
   0x1 LB: > { %s690_s19 = sadd.s32 4294967295, %s863_s18   ;;  %p694_p0 = scmp.ge.s32.totalorder %s863_s18, 1  ;;  %s863_s18 = sphi %s895_s18, %s15_s18  }
   0x2   : > { %p188_p1 = scmp.lt.s32.totalorder %s863_s18, 3 }
   0x4   : > { %p189_p2 = pnand %p694_p0, %p188_p1 }
   0x5   : > { %v236_v0 = vld [vmem:[%s982_s1] sm:$0xff] (!%p189_p2)  ;;  %v237_v1 = vld [vmem:[%s982_s1 + $0x8] sm:$0xff] (!%p189_p2)  ;;  %v238_v2 = vld [vmem:[%s982_s1 + $0x10] sm:$0xff] (!%p189_p2)  ;;  %s695_s26 = sshll.u32 (!%p189_p2), %s690_s19, 3  ;;  %vm247_vm0 = vcmask (!%p189_p2), 261120   ;;  %vm487_vm1 = vcmask (!%p189_p2), 64512  }
   0x6   : > { %192 = sbr.rel (%p189_p2) target bundleno = 468 (0x1d4), region = 40  ;;  %v813_v3 = vpack.c.bf16 (!%p189_p2), %v237_v1, %v236_v0  ;;  %v239_v4 = vld [vmem:[%s982_s1 + $0x18] sm:$0xff] (!%p189_p2)  ;;  %p217_p3 = scmp.lt.s32.totalorder (!%p189_p2), %s695_s26, 15  ;;  %v377_v6 = vld [vmem:[%s984_s3] sm:$0xff] (!%p189_p2)  ;;  %v378_v7 = vld [vmem:[%s984_s3 + $0x8] sm:$0xff] (!%p189_p2)  ;;  %vm625_vm2 = vcmask (!%p189_p2), 785408  }
   0x7   : > { %v817_v5 = vpack.c.bf16 (!%p189_p2), %v239_v4, %v238_v2  ;;  %v821_v8 = vpack.c.bf16 (!%p189_p2), %v378_v7, %v377_v6  ;;  %v379_v9 = vld [vmem:[%s984_s3 + $0x10] sm:$0xff] (!%p189_p2)  ;;  %v380_v10 = vld [vmem:[%s984_s3 + $0x18] sm:$0xff] (!%p189_p2)  ;;  %v486_v20 = vld [vmem:[%s985_s4] sm:$0xff] (!%p189_p2) }
   0x8   : > { %829 = vmatprep.subr.bf16.mxu1 (!%p189_p2), %v813_v3  ;;  %814 = vmatprep.subr.bf16.mxu0 (!%p189_p2), %v813_v3  ;;  %v825_v14 = vpack.c.bf16 (!%p189_p2), %v380_v10, %v379_v9  ;;  %v699_v33 = vld [vmem:[%s983_s2] ss:$0 sm:$0xff] (!%p189_p2) }
   0x9   : > { %831 = vmatpush3.bf16.msra.mxu1 (!%p189_p2), %v813_v3  ;;  %816 = vmatpush3.bf16.msra.mxu0 (!%p189_p2), %v813_v3 }
   0xa   : > { %830 = vmatprep.subr.bf16.mxu1 (!%p189_p2), %v817_v5  ;;  %818 = vmatprep.subr.bf16.mxu0 (!%p189_p2), %v817_v5 }
   0xd   : > { %s988_s26 = smov (!%p217_p3, %s695_s26), 15  ;;  %832 = vmatpush3.bf16.msra.mxu1 %v817_v5  ;;  %820 = vmatpush3.bf16.msra.mxu0 %v817_v5 }
   0xe   : > { %s696_s8 = sshll.u32 %s988_s26, 3  ;;  %822 = vmatprep.subr.bf16.mxu1 %v821_v8  ;;  %799 = vmatprep.subr.mxu0 %v486_v20 }
   0xf   : > { %s220_s11 = scalar_lea.vmem %s981_s0, %s696_s8  ;;  %s226_s21 = scalar_lea.vmem %s986_s5, %s696_s8 }
  0x10   : > { %v232_v11 = vld [vmem:[%s220_s11 + $0x20] sm:$0xff]  ;;  %v233_v12 = vld [vmem:[%s220_s11 + $0x28] sm:$0xff]  ;;  %v234_v13 = vld [vmem:[%s220_s11 + $0x30] sm:$0xff] }
  0x11   : > { %773 = vmatprep.mubr.msk.f32.mxu1 %vm247_vm0, %v232_v11  ;;  %v228_v15 = vld [vmem:[%s220_s11] sm:$0xff]  ;;  %v235_v16 = vld [vmem:[%s220_s11 + $0x38] sm:$0xff]  ;;  %v229_v17 = vld [vmem:[%s220_s11 + $0x8] sm:$0xff] }
  0x12   : > { %767 = vmatprep.mubr.msk.f32.mxu0 %vm247_vm0, %v228_v15  ;;  %774 = vmatmul.mubr.msk.f32.vlgmr.msra.gmra.mrb[0].mxu1 %vm247_vm0, %v233_v12  ;;  %v230_v18 = vld [vmem:[%s220_s11 + $0x10] sm:$0xff]  ;;  %v231_v19 = vld [vmem:[%s220_s11 + $0x18] sm:$0xff] }
  0x13   : > { %824 = vmatpush3.bf16.msra.mxu1 %v821_v8  ;;  %776 = vmatprep.mubr.msk.f32.mxu1 %vm247_vm0, %v234_v13 }
  0x14   : > { %826 = vmatprep.subr.bf16.mxu1 %v825_v14  ;;  %768 = vmatmul.mubr.msk.f32.vlgmr.msra.gmra.mrb[0].mxu0 %vm247_vm0, %v229_v17 }
  0x15   : > { %770 = vmatprep.mubr.msk.f32.mxu0 %vm247_vm0, %v230_v18  ;;  %800 = vmatpush3.msra.mxu0 %v486_v20 }
  0x16   : > { %777 = vmatmul.mubr.msk.f32.gmra.mrb[2].mxu1 %vm247_vm0, %v235_v16 }
  0x17   : > { %828 = vmatpush3.bf16.msra.mxu1 %v825_v14  ;;  %787 = vmatprep.mubr.msk.f32.mxu1 %vm247_vm0, %v228_v15 }
  0x18   : > { %771 = vmatmul.mubr.msk.f32.gmra.mrb[2].mxu0 %vm247_vm0, %v231_v19 }
  0x1a   : > { %788 = vmatmul.mubr.msk.f32.vlgmr.msra.gmra.mrb[4].mxu1 %vm247_vm0, %v229_v17 }
  0x1b   : > { %790 = vmatprep.mubr.msk.f32.mxu1 %vm247_vm0, %v230_v18 }
  0x1e   : > { %791 = vmatmul.mubr.msk.f32.gmra.mrb[6].mxu1 %vm247_vm0, %v231_v19 }
  0x1f   : > { %793 = vmatprep.mubr.msk.f32.mxu1 %vm247_vm0, %v232_v11 }
  0x22   : > { %794 = vmatmul.mubr.msk.f32.gmra.mrb[8].mxu1 %vm247_vm0, %v233_v12 }
  0x23   : > { %796 = vmatprep.mubr.msk.f32.mxu1 %vm247_vm0, %v234_v13 }
  0x26   : > { %797 = vmatmul.mubr.msk.f32.gmra.mrb[10].mxu1 %vm247_vm0, %v235_v16 }
  0xe5   : > { %v775_v21 = vpop.f32.mrb[0].mxu1 }
  0xe6   : > { %v358_v22 = vpop.f32.mrb[1].mxu1  ;;  %v364_v42 = vadd.f32 %v775_v21, %v699_v33 }
  0xe7   : > { %v359_v43 = vadd.f32 %v699_v33, %v358_v22 }
  0xe9   : > { %v778_v23 = vpop.f32.mrb[2].mxu1 }
  0xea   : > { %v368_v24 = vpop.f32.mrb[3].mxu1  ;;  %v374_v48 = vadd.f32 %v778_v23, %v699_v33 }
  0xeb   : > { %v369_v49 = vadd.f32 %v699_v33, %v368_v24 }
  0xed   : > { %v789_v25 = vpop.f32.mrb[4].mxu1 }
  0xee   : > { %v447_v26 = vpop.f32.mrb[5].mxu1 }
  0xef   : > { %801 = vmatprep.mubr.msk.f32.mxu0 %vm487_vm1, %v447_v26 }
  0xf0   : > { %802 = vmatmul.mubr.msk.f32.vlgmr.msra.gmra.mrb[0].mxu0 %vm487_vm1, %v789_v25 }
  0xf1   : > { %v792_v27 = vpop.f32.mrb[6].mxu1 }
  0xf2   : > { %v457_v28 = vpop.f32.mrb[7].mxu1 }
  0xf3   : > { %804 = vmatprep.mubr.msk.f32.mxu0 %vm487_vm1, %v457_v28 }
  0xf4   : > { %805 = vmatmul.mubr.msk.f32.gmra.mrb[2].mxu0 %vm487_vm1, %v792_v27 }
  0xf5   : > { %v795_v29 = vpop.f32.mrb[8].mxu1 }
  0xf6   : > { %v467_v30 = vpop.f32.mrb[9].mxu1 }
  0xf7   : > { %807 = vmatprep.mubr.msk.f32.mxu0 %vm487_vm1, %v467_v30 }
  0xf8   : > { %808 = vmatmul.mubr.msk.f32.gmra.mrb[4].mxu0 %vm487_vm1, %v795_v29 }
  0xf9   : > { %v798_v31 = vpop.f32.mrb[10].mxu1 }
  0xfa   : > { %v477_v32 = vpop.f32.mrb[11].mxu1 }
  0xfb   : > { %810 = vmatprep.mubr.msk.f32.mxu0 %vm487_vm1, %v477_v32 }
  0xfc   : > { %811 = vmatmul.mubr.msk.f32.gmra.mrb[6].mxu0 %vm487_vm1, %v798_v31 }
 0x1c3   : > { %v803_v34 = vpop.f32.mrb[0].mxu0 }
 0x1c4   : > { %v833_v35 = vadd.f32 %v803_v34, %v699_v33  ;;  %v578_v36 = vpop.f32.mrb[1].mxu0 }
 0x1c5   : > { %v834_v37 = vadd.f32 %v699_v33, %v578_v36 }
 0x1c6   : > { %627 = vst.msk [vmem:[%s226_s21 + $0x8] sm:$0xff] %vm625_vm2, %v833_v35 }
 0x1c7   : > { %626 = vst.msk [vmem:[%s226_s21] sm:$0xff] %vm625_vm2, %v834_v37  ;;  %v806_v38 = vpop.f32.mrb[2].mxu0 }
 0x1c8   : > { %v835_v39 = vadd.f32 %v806_v38, %v699_v33  ;;  %v588_v40 = vpop.f32.mrb[3].mxu0 }
 0x1c9   : > { %v836_v41 = vadd.f32 %v699_v33, %v588_v40 }
 0x1ca   : > { %629 = vst.msk [vmem:[%s226_s21 + $0x18] sm:$0xff] %vm625_vm2, %v835_v39 }
 0x1cb   : > { %628 = vst.msk [vmem:[%s226_s21 + $0x10] sm:$0xff] %vm625_vm2, %v836_v41  ;;  %v809_v44 = vpop.f32.mrb[4].mxu0 }
 0x1cc   : > { %v622_v45 = vadd.f32 %v809_v44, %v364_v42  ;;  %v598_v46 = vpop.f32.mrb[5].mxu0 }
 0x1cd   : > { %v621_v47 = vadd.f32 %v598_v46, %v359_v43 }
 0x1ce   : > { %631 = vst.msk [vmem:[%s226_s21 + $0x28] sm:$0xff] %vm625_vm2, %v622_v45 }
 0x1cf   : > { %630 = vst.msk [vmem:[%s226_s21 + $0x20] sm:$0xff] %vm625_vm2, %v621_v47  ;;  %v812_v50 = vpop.f32.mrb[6].mxu0 }
 0x1d0   : > { %v624_v51 = vadd.f32 %v812_v50, %v374_v48  ;;  %v608_v52 = vpop.f32.mrb[7].mxu0 }
 0x1d1   : > { %v623_v53 = vadd.f32 %v608_v52, %v369_v49 }
 0x1d2   : > { %633 = vst.msk [vmem:[%s226_s21 + $0x38] sm:$0xff] %vm625_vm2, %v624_v51 }
 0x1d3   : > { %632 = vst.msk [vmem:[%s226_s21 + $0x30] sm:$0xff] %vm625_vm2, %v623_v53 }
 0x1d4 PF: > { %s15_s18 = sadd.s32 1, %s863_s18  }
 0x1d5   : > { %p12_p4 = scmp.ge.s32.totalorder %s15_s18, 4  }
 0x1d7   :  { %14 = sbr.rel (!%p12_p4) target bundleno = 1 (0x1), region = 70 }

</bundles_post_ra>
